<compile_context>
chip_gen: v5e
topology: v5e:2x2
jax: 0.10.0
libtpu: 0.0.40
codegen_flags: <defaults>
</compile_context>

<pallas_src>
import jax
import jax.numpy as jnp
from jax.experimental import pallas as pl
from jax.experimental.pallas import tpu as pltpu

LANE = 128
SUBLANE = 8
BATCH_ALIGN = 16   # bf16 sublane packing: keep batch tiles 16-row aligned


def _round_up(n, m):
    return ((n + m - 1) // m) * m


def actor_critic_kernel(x_ref, w1_ref, b1_ref, w2_ref, b2_ref, wh_ref, bh_ref,
                        head_ref):
    # Shared trunk: Linear -> tanh -> Linear -> tanh.
    # bf16 MXU operands (x already streamed as bf16), f32 accumulate/bias/tanh.
    h = jnp.tanh(
        jnp.dot(x_ref[...], w1_ref[...], preferred_element_type=jnp.float32)
        + b1_ref[...]
    )
    h = jnp.tanh(
        jnp.dot(h.astype(jnp.bfloat16), w2_ref[...],
                preferred_element_type=jnp.float32) + b2_ref[...]
    )
    # Fused (mean | value) head -> narrow f32 output slab.
    head_ref[...] = (
        jnp.dot(h.astype(jnp.bfloat16), wh_ref[...],
                preferred_element_type=jnp.float32) + bh_ref[...]
    )


def pack_params(params):
    """Pad params once, fuse mean/value heads, cast matmul weights to bf16."""
    obs_dim, hidden = params["w1"].shape
    act_dim = params["wm"].shape[1]
    obs_p = _round_up(obs_dim, BATCH_ALIGN)      # small bf16 contraction dim
    hid_p = _round_up(hidden, LANE)              # lane axis of resident intermediates
    head_np = _round_up(act_dim + 1, SUBLANE)    # narrow fused (mean|value) head

    def pad2(a, rows, cols):
        return jnp.pad(a, ((0, rows - a.shape[0]), (0, cols - a.shape[1])))

    w1 = pad2(params["w1"], obs_p, hid_p).astype(jnp.bfloat16)
    b1 = pad2(params["b1"], 1, hid_p)
    w2 = pad2(params["w2"], hid_p, hid_p).astype(jnp.bfloat16)
    b2 = pad2(params["b2"], 1, hid_p)

    # Fused head: columns [0:act_dim] = policy mean, column [act_dim] = value.
    # TODO(synk): keep the value column in f32 if the critic loss ever needs more
    # than bf16-matmul precision (the head is tiny, so the cost would be ~zero).
    wh = pad2(jnp.concatenate([params["wm"], params["wv"]], axis=1),
              hid_p, head_np).astype(jnp.bfloat16)
    bh = pad2(jnp.concatenate([params["bm"], params["bv"]], axis=1), 1, head_np)

    return dict(
        w1=w1, b1=b1, w2=w2, b2=b2, wh=wh, bh=bh,
        log_std=params["log_std"],
        dims=(obs_dim, hidden, act_dim, obs_p, hid_p, head_np),
    )


def actor_critic_forward(x, packed, *, batch_tile=1024):
    """x: (B, obs_dim) float32. Returns (mean (B, act), std (act,), value (B, 1))."""
    obs_dim, hidden, act_dim, obs_p, hid_p, head_np = packed["dims"]
    B = x.shape[0]

    # Pad batch only to the bf16-friendly row multiple; ragged last tile via cdiv.
    b_pad = _round_up(B, BATCH_ALIGN)
    tb = min(_round_up(batch_tile, BATCH_ALIGN), b_pad)
    # v7x has 2 TensorCores: give the 'parallel' batch axis >=2 grid steps when
    # the batch allows (negligible ~0.35us/step overhead on 1-TC v5e/v6e).
    if b_pad > BATCH_ALIGN and pl.cdiv(b_pad, tb) < 2:
        tb = max(BATCH_ALIGN, _round_up(pl.cdiv(b_pad, 2), BATCH_ALIGN))
    num_tiles = pl.cdiv(b_pad, tb)

    # Stream activations as bf16 (MXU consumes bf16 anyway -> half the input bytes).
    x_p = jnp.pad(x, ((0, b_pad - B), (0, obs_p - obs_dim))).astype(jnp.bfloat16)

    weight_args = (packed["w1"], packed["b1"], packed["w2"], packed["b2"],
                   packed["wh"], packed["bh"])
    weight_bytes = sum(int(a.size) * a.dtype.itemsize for a in weight_args)
    act_tile_bytes = tb * obs_p * 2 + tb * head_np * 4

    def run(single_buffer_weights):
        def const(shape):
            if single_buffer_weights and hasattr(pl, "Buffered"):
                # Constant index map -> weights never re-DMA; single-buffer them to
                # halve resident weight VMEM (matters for big hidden / v7x 64 MiB).
                return pl.BlockSpec(shape, lambda i: (0, 0),
                                    pipeline_mode=pl.Buffered(1))
            return pl.BlockSpec(shape, lambda i: (0, 0))

        w_mult = 1 if single_buffer_weights else 2
        vmem_limit = min(48 << 20,
                         max(16 << 20,
                             w_mult * weight_bytes + 2 * act_tile_bytes + (4 << 20)))
        # TODO(synk): add a hidden-dim (K)-tiled fallback if resident weights ever
        # approach ~24-32 MiB (only relevant for very large hidden_dim on v7x).

        return pl.pallas_call(
            actor_critic_kernel,
            out_shape=jax.ShapeDtypeStruct((b_pad, head_np), jnp.float32),
            grid=(num_tiles,),
            in_specs=[
                pl.BlockSpec((tb, obs_p), lambda i: (i, 0)),   # x tile (bf16, streamed)
                const((obs_p, hid_p)),                         # W1 (VMEM resident)
                const((1, hid_p)),                             # b1
                const((hid_p, hid_p)),                         # W2
                const((1, hid_p)),                             # b2
                const((hid_p, head_np)),                       # fused head weights
                const((1, head_np)),                           # fused head bias
            ],
            out_specs=pl.BlockSpec((tb, head_np), lambda i: (i, 0)),
            compiler_params=pltpu.CompilerParams(
                dimension_semantics=("parallel",),
                vmem_limit_bytes=int(vmem_limit),
            ),
        )(x_p, *weight_args)

    try:
        out = run(True)
    except Exception:
        # pl.Buffered(1) unsupported on this jax/Mosaic build: fall back to the
        # default double-buffered weight pipeline (identical numerics).
        out = run(False)

    mean = out[:B, :act_dim]
    value = out[:B, act_dim:act_dim + 1]
    std = jnp.exp(packed["log_std"])[0]   # state-independent; computed outside kernel
    return mean, std, value


def init_params(key, obs_dim, act_dim, hidden_dim):
    """Deterministic init mimicking PyTorch nn.Linear default (uniform +-1/sqrt(fan_in)).
    Weights are stored TRANSPOSED vs PyTorch: (in_features, out_features)."""
    ks = jax.random.split(key, 8)

    def linear(kw, kb, fan_in, fan_out):
        bound = 1.0 / jnp.sqrt(jnp.float32(fan_in))
        w = jax.random.uniform(kw, (fan_in, fan_out), jnp.float32, -bound, bound)
        b = jax.random.uniform(kb, (1, fan_out), jnp.float32, -bound, bound)
        return w, b

    w1, b1 = linear(ks[0], ks[1], obs_dim, hidden_dim)
    w2, b2 = linear(ks[2], ks[3], hidden_dim, hidden_dim)
    wm, bm = linear(ks[4], ks[5], hidden_dim, act_dim)
    wv, bv = linear(ks[6], ks[7], hidden_dim, 1)
    log_std = jnp.zeros((1, act_dim), jnp.float32)  # nn.Parameter(torch.zeros(act_dim))
    return dict(w1=w1, b1=b1, w2=w2, b2=b2, wm=wm, bm=bm, wv=wv, bv=bv,
                log_std=log_std)


def reference_forward(x, p):
    h = jnp.tanh(x @ p["w1"] + p["b1"])
    h = jnp.tanh(h @ p["w2"] + p["b2"])
    mean = h @ p["wm"] + p["bm"]
    std = jnp.exp(p["log_std"])[0]
    value = h @ p["wv"] + p["bv"]
    return mean, std, value


if __name__ == "__main__":
    OBS, ACT, HID = 8, 4, 32

    key = jax.random.PRNGKey(0)
    k_x, k_p, k_x2 = jax.random.split(key, 3)

    params = init_params(k_p, OBS, ACT, HID)
    packed = pack_params(params)

    # bf16 MXU operands with f32 accumulation -> loosened tolerances vs f32 reference.
    ATOL = RTOL = 2e-2

    # --- small batch (single grid step) ---
    B = 2
    x = jax.random.normal(k_x, (B, OBS), jnp.float32)
    mean, std, value = actor_critic_forward(x, packed)
    jax.block_until_ready((mean, std, value))

    mean_r, std_r, value_r = reference_forward(x, params)
    assert mean.shape == (B, ACT) and std.shape == (ACT,) and value.shape == (B, 1)
    assert jnp.allclose(mean, mean_r, atol=ATOL, rtol=RTOL)
    assert jnp.allclose(std, std_r, atol=1e-6, rtol=1e-6)
    assert jnp.allclose(value, value_r, atol=ATOL, rtol=RTOL)

    # --- larger batch exercising batch tiling + ragged cdiv grid (>=2 steps) ---
    B2 = 300
    x2 = jax.random.normal(k_x2, (B2, OBS), jnp.float32)
    mean2, std2, value2 = actor_critic_forward(x2, packed)
    jax.block_until_ready((mean2, std2, value2))

    mean2_r, std2_r, value2_r = reference_forward(x2, params)
    assert mean2.shape == (B2, ACT) and value2.shape == (B2, 1)
    assert jnp.allclose(mean2, mean2_r, atol=ATOL, rtol=RTOL)
    assert jnp.allclose(value2, value2_r, atol=ATOL, rtol=RTOL)

    print("KERNEL_OK")
</pallas_src>

<mosaic_0001>
module attributes {stable_mosaic.version = 11 : i64} {
  func.func @actor_critic_kernel(%arg0: i32, %arg1: memref<16x16xbf16, #tpu.memory_space<vmem>>, %arg2: memref<16x128xbf16, #tpu.memory_space<vmem>>, %arg3: memref<1x128xf32, #tpu.memory_space<vmem>>, %arg4: memref<128x128xbf16, #tpu.memory_space<vmem>>, %arg5: memref<1x128xf32, #tpu.memory_space<vmem>>, %arg6: memref<128x8xbf16, #tpu.memory_space<vmem>>, %arg7: memref<1x8xf32, #tpu.memory_space<vmem>>, %arg8: memref<16x8xf32, #tpu.memory_space<vmem>>) attributes {dimension_semantics = [#tpu.dimension_semantics<parallel>], iteration_bounds = array<i64: 1>, scalar_prefetch = 0 : i64, scratch_operands = 0 : i64, tpu.core_type = #tpu.core_type<tc>, window_params = [{transform_indices = @transform_0, window_bounds = array<i64: 16, 16>}, {pipeline_mode = #tpu.pipeline_mode<synchronous>, transform_indices = @transform_1, window_bounds = array<i64: 16, 128>}, {pipeline_mode = #tpu.pipeline_mode<synchronous>, transform_indices = @transform_2, window_bounds = array<i64: 1, 128>}, {pipeline_mode = #tpu.pipeline_mode<synchronous>, transform_indices = @transform_3, window_bounds = array<i64: 128, 128>}, {pipeline_mode = #tpu.pipeline_mode<synchronous>, transform_indices = @transform_4, window_bounds = array<i64: 1, 128>}, {pipeline_mode = #tpu.pipeline_mode<synchronous>, transform_indices = @transform_5, window_bounds = array<i64: 128, 8>}, {pipeline_mode = #tpu.pipeline_mode<synchronous>, transform_indices = @transform_6, window_bounds = array<i64: 1, 8>}, {transform_indices = @transform_7, window_bounds = array<i64: 16, 8>}]} {
    %c0 = arith.constant 0 : index
    %c0_0 = arith.constant 0 : index
    %0 = vector.load %arg1[%c0, %c0_0] : memref<16x16xbf16, #tpu.memory_space<vmem>>, vector<16x16xbf16>
    %c0_1 = arith.constant 0 : index
    %c0_2 = arith.constant 0 : index
    %1 = vector.load %arg2[%c0_1, %c0_2] : memref<16x128xbf16, #tpu.memory_space<vmem>>, vector<16x128xbf16>
    %cst = arith.constant dense<0.000000e+00> : vector<16x128xf32>
    %2 = tpu.matmul %0, %1, %cst {dimension_numbers = #tpu.dot_dimension_numbers<[1], [0], [0], [1], [0, 0, 1, 1], [], []>} : vector<16x16xbf16>, vector<16x128xbf16>, vector<16x128xf32> -> vector<16x128xf32>
    %c0_3 = arith.constant 0 : index
    %c0_4 = arith.constant 0 : index
    %3 = vector.load %arg3[%c0_3, %c0_4] : memref<1x128xf32, #tpu.memory_space<vmem>>, vector<1x128xf32>
    %4 = vector.broadcast %3 : vector<1x128xf32> to vector<16x128xf32>
    %5 = arith.addf %2, %4 : vector<16x128xf32>
    %6 = math.tanh %5 : vector<16x128xf32>
    %7 = arith.truncf %6 : vector<16x128xf32> to vector<16x128xbf16>
    %c0_5 = arith.constant 0 : index
    %c0_6 = arith.constant 0 : index
    %8 = vector.load %arg4[%c0_5, %c0_6] : memref<128x128xbf16, #tpu.memory_space<vmem>>, vector<128x128xbf16>
    %cst_7 = arith.constant dense<0.000000e+00> : vector<16x128xf32>
    %9 = tpu.matmul %7, %8, %cst_7 {dimension_numbers = #tpu.dot_dimension_numbers<[1], [0], [0], [1], [0, 0, 1, 1], [], []>} : vector<16x128xbf16>, vector<128x128xbf16>, vector<16x128xf32> -> vector<16x128xf32>
    %c0_8 = arith.constant 0 : index
    %c0_9 = arith.constant 0 : index
    %10 = vector.load %arg5[%c0_8, %c0_9] : memref<1x128xf32, #tpu.memory_space<vmem>>, vector<1x128xf32>
    %11 = vector.broadcast %10 : vector<1x128xf32> to vector<16x128xf32>
    %12 = arith.addf %9, %11 : vector<16x128xf32>
    %13 = math.tanh %12 : vector<16x128xf32>
    %14 = arith.truncf %13 : vector<16x128xf32> to vector<16x128xbf16>
    %c0_10 = arith.constant 0 : index
    %c0_11 = arith.constant 0 : index
    %15 = vector.load %arg6[%c0_10, %c0_11] : memref<128x8xbf16, #tpu.memory_space<vmem>>, vector<128x8xbf16>
    %cst_12 = arith.constant dense<0.000000e+00> : vector<16x8xf32>
    %16 = tpu.matmul %14, %15, %cst_12 {dimension_numbers = #tpu.dot_dimension_numbers<[1], [0], [0], [1], [0, 0, 1, 1], [], []>} : vector<16x128xbf16>, vector<128x8xbf16>, vector<16x8xf32> -> vector<16x8xf32>
    %c0_13 = arith.constant 0 : index
    %c0_14 = arith.constant 0 : index
    %17 = vector.load %arg7[%c0_13, %c0_14] : memref<1x8xf32, #tpu.memory_space<vmem>>, vector<1x8xf32>
    %18 = vector.broadcast %17 : vector<1x8xf32> to vector<16x8xf32>
    %19 = arith.addf %16, %18 : vector<16x8xf32>
    %c0_15 = arith.constant 0 : index
    %c0_16 = arith.constant 0 : index
    %20 = vector.load %arg8[%c0_15, %c0_16] : memref<16x8xf32, #tpu.memory_space<vmem>>, vector<16x8xf32>
    tpu.vector_store %arg8[%c0_15, %c0_16], %19 {strides = array<i32>} : memref<16x8xf32, #tpu.memory_space<vmem>>, vector<16x8xf32>,
    return
  }
  func.func @transform_0(%arg0: i32) -> (i32, i32) {
    %c0_i32 = arith.constant 0 : i32
    %c0_i32_0 = arith.constant 0 : i32
    return %arg0, %c0_i32 : i32, i32
  }
  func.func @transform_1(%arg0: i32) -> (i32, i32) {
    %c0_i32 = arith.constant 0 : i32
    %c0_i32_0 = arith.constant 0 : i32
    %c0_i32_1 = arith.constant 0 : i32
    return %c0_i32, %c0_i32_0 : i32, i32
  }
  func.func @transform_2(%arg0: i32) -> (i32, i32) {
    %c0_i32 = arith.constant 0 : i32
    %c0_i32_0 = arith.constant 0 : i32
    %c0_i32_1 = arith.constant 0 : i32
    return %c0_i32, %c0_i32_0 : i32, i32
  }
  func.func @transform_3(%arg0: i32) -> (i32, i32) {
    %c0_i32 = arith.constant 0 : i32
    %c0_i32_0 = arith.constant 0 : i32
    %c0_i32_1 = arith.constant 0 : i32
    return %c0_i32, %c0_i32_0 : i32, i32
  }
  func.func @transform_4(%arg0: i32) -> (i32, i32) {
    %c0_i32 = arith.constant 0 : i32
    %c0_i32_0 = arith.constant 0 : i32
    %c0_i32_1 = arith.constant 0 : i32
    return %c0_i32, %c0_i32_0 : i32, i32
  }
  func.func @transform_5(%arg0: i32) -> (i32, i32) {
    %c0_i32 = arith.constant 0 : i32
    %c0_i32_0 = arith.constant 0 : i32
    %c0_i32_1 = arith.constant 0 : i32
    return %c0_i32, %c0_i32_0 : i32, i32
  }
  func.func @transform_6(%arg0: i32) -> (i32, i32) {
    %c0_i32 = arith.constant 0 : i32
    %c0_i32_0 = arith.constant 0 : i32
    %c0_i32_1 = arith.constant 0 : i32
    return %c0_i32, %c0_i32_0 : i32, i32
  }
  func.func @transform_7(%arg0: i32) -> (i32, i32) {
    %c0_i32 = arith.constant 0 : i32
    %c0_i32_0 = arith.constant 0 : i32
    return %arg0, %c0_i32 : i32, i32
  }
}

module attributes {stable_mosaic.version = 11 : i64} {
  func.func @actor_critic_kernel(%arg0: i32, %arg1: memref<16x16xbf16, #tpu.memory_space<vmem>>, %arg2: memref<16x128xbf16, #tpu.memory_space<vmem>>, %arg3: memref<1x128xf32, #tpu.memory_space<vmem>>, %arg4: memref<128x128xbf16, #tpu.memory_space<vmem>>, %arg5: memref<1x128xf32, #tpu.memory_space<vmem>>, %arg6: memref<128x8xbf16, #tpu.memory_space<vmem>>, %arg7: memref<1x8xf32, #tpu.memory_space<vmem>>, %arg8: memref<16x8xf32, #tpu.memory_space<vmem>>) attributes {dimension_semantics = [#tpu.dimension_semantics<parallel>], iteration_bounds = array<i64: 1>, scalar_prefetch = 0 : i64, scratch_operands = 0 : i64, tpu.core_type = #tpu.core_type<tc>, window_params = [{transform_indices = @transform_0, window_bounds = array<i64: 16, 16>}, {pipeline_mode = #tpu.pipeline_mode<synchronous>, transform_indices = @transform_1, window_bounds = array<i64: 16, 128>}, {pipeline_mode = #tpu.pipeline_mode<synchronous>, transform_indices = @transform_2, window_bounds = array<i64: 1, 128>}, {pipeline_mode = #tpu.pipeline_mode<synchronous>, transform_indices = @transform_3, window_bounds = array<i64: 128, 128>}, {pipeline_mode = #tpu.pipeline_mode<synchronous>, transform_indices = @transform_4, window_bounds = array<i64: 1, 128>}, {pipeline_mode = #tpu.pipeline_mode<synchronous>, transform_indices = @transform_5, window_bounds = array<i64: 128, 8>}, {pipeline_mode = #tpu.pipeline_mode<synchronous>, transform_indices = @transform_6, window_bounds = array<i64: 1, 8>}, {transform_indices = @transform_7, window_bounds = array<i64: 16, 8>}]} {
    %c0 = arith.constant 0 : index
    %c0_0 = arith.constant 0 : index
    %0 = vector.load %arg1[%c0, %c0_0] : memref<16x16xbf16, #tpu.memory_space<vmem>>, vector<16x16xbf16>
    %c0_1 = arith.constant 0 : index
    %c0_2 = arith.constant 0 : index
    %1 = vector.load %arg2[%c0_1, %c0_2] : memref<16x128xbf16, #tpu.memory_space<vmem>>, vector<16x128xbf16>
    %cst = arith.constant dense<0.000000e+00> : vector<16x128xf32>
    %2 = tpu.matmul %0, %1, %cst {dimension_numbers = #tpu.dot_dimension_numbers<[1], [0], [0], [1], [0, 0, 1, 1], [], []>} : vector<16x16xbf16>, vector<16x128xbf16>, vector<16x128xf32> -> vector<16x128xf32>
    %c0_3 = arith.constant 0 : index
    %c0_4 = arith.constant 0 : index
    %3 = vector.load %arg3[%c0_3, %c0_4] : memref<1x128xf32, #tpu.memory_space<vmem>>, vector<1x128xf32>
    %4 = vector.broadcast %3 : vector<1x128xf32> to vector<16x128xf32>
    %5 = arith.addf %2, %4 : vector<16x128xf32>
    %6 = math.tanh %5 : vector<16x128xf32>
    %7 = arith.truncf %6 : vector<16x128xf32> to vector<16x128xbf16>
    %c0_5 = arith.constant 0 : index
    %c0_6 = arith.constant 0 : index
    %8 = vector.load %arg4[%c0_5, %c0_6] : memref<128x128xbf16, #tpu.memory_space<vmem>>, vector<128x128xbf16>
    %cst_7 = arith.constant dense<0.000000e+00> : vector<16x128xf32>
    %9 = tpu.matmul %7, %8, %cst_7 {dimension_numbers = #tpu.dot_dimension_numbers<[1], [0], [0], [1], [0, 0, 1, 1], [], []>} : vector<16x128xbf16>, vector<128x128xbf16>, vector<16x128xf32> -> vector<16x128xf32>
    %c0_8 = arith.constant 0 : index
    %c0_9 = arith.constant 0 : index
    %10 = vector.load %arg5[%c0_8, %c0_9] : memref<1x128xf32, #tpu.memory_space<vmem>>, vector<1x128xf32>
    %11 = vector.broadcast %10 : vector<1x128xf32> to vector<16x128xf32>
    %12 = arith.addf %9, %11 : vector<16x128xf32>
    %13 = math.tanh %12 : vector<16x128xf32>
    %14 = arith.truncf %13 : vector<16x128xf32> to vector<16x128xbf16>
    %c0_10 = arith.constant 0 : index
    %c0_11 = arith.constant 0 : index
    %15 = vector.load %arg6[%c0_10, %c0_11] : memref<128x8xbf16, #tpu.memory_space<vmem>>, vector<128x8xbf16>
    %cst_12 = arith.constant dense<0.000000e+00> : vector<16x8xf32>
    %16 = tpu.matmul %14, %15, %cst_12 {dimension_numbers = #tpu.dot_dimension_numbers<[1], [0], [0], [1], [0, 0, 1, 1], [], []>} : vector<16x128xbf16>, vector<128x8xbf16>, vector<16x8xf32> -> vector<16x8xf32>
    %c0_13 = arith.constant 0 : index
    %c0_14 = arith.constant 0 : index
    %17 = vector.load %arg7[%c0_13, %c0_14] : memref<1x8xf32, #tpu.memory_space<vmem>>, vector<1x8xf32>
    %18 = vector.broadcast %17 : vector<1x8xf32> to vector<16x8xf32>
    %19 = arith.addf %16, %18 : vector<16x8xf32>
    %c0_15 = arith.constant 0 : index
    %c0_16 = arith.constant 0 : index
    %20 = vector.load %arg8[%c0_15, %c0_16] : memref<16x8xf32, #tpu.memory_space<vmem>>, vector<16x8xf32>
    tpu.vector_store %arg8[%c0_15, %c0_16], %19 {strides = array<i32>} : memref<16x8xf32, #tpu.memory_space<vmem>>, vector<16x8xf32>,
    return
  }
  func.func @transform_0(%arg0: i32) -> (i32, i32) {
    %c0_i32 = arith.constant 0 : i32
    %c0_i32_0 = arith.constant 0 : i32
    return %arg0, %c0_i32 : i32, i32
  }
  func.func @transform_1(%arg0: i32) -> (i32, i32) {
    %c0_i32 = arith.constant 0 : i32
    %c0_i32_0 = arith.constant 0 : i32
    %c0_i32_1 = arith.constant 0 : i32
    return %c0_i32, %c0_i32_0 : i32, i32
  }
  func.func @transform_2(%arg0: i32) -> (i32, i32) {
    %c0_i32 = arith.constant 0 : i32
    %c0_i32_0 = arith.constant 0 : i32
    %c0_i32_1 = arith.constant 0 : i32
    return %c0_i32, %c0_i32_0 : i32, i32
  }
  func.func @transform_3(%arg0: i32) -> (i32, i32) {
    %c0_i32 = arith.constant 0 : i32
    %c0_i32_0 = arith.constant 0 : i32
    %c0_i32_1 = arith.constant 0 : i32
    return %c0_i32, %c0_i32_0 : i32, i32
  }
  func.func @transform_4(%arg0: i32) -> (i32, i32) {
    %c0_i32 = arith.constant 0 : i32
    %c0_i32_0 = arith.constant 0 : i32
    %c0_i32_1 = arith.constant 0 : i32
    return %c0_i32, %c0_i32_0 : i32, i32
  }
  func.func @transform_5(%arg0: i32) -> (i32, i32) {
    %c0_i32 = arith.constant 0 : i32
    %c0_i32_0 = arith.constant 0 : i32
    %c0_i32_1 = arith.constant 0 : i32
    return %c0_i32, %c0_i32_0 : i32, i32
  }
  func.func @transform_6(%arg0: i32) -> (i32, i32) {
    %c0_i32 = arith.constant 0 : i32
    %c0_i32_0 = arith.constant 0 : i32
    %c0_i32_1 = arith.constant 0 : i32
    return %c0_i32, %c0_i32_0 : i32, i32
  }
  func.func @transform_7(%arg0: i32) -> (i32, i32) {
    %c0_i32 = arith.constant 0 : i32
    %c0_i32_0 = arith.constant 0 : i32
    return %arg0, %c0_i32 : i32, i32
  }
}

</mosaic_0001>

<bundles_post_ra>
// kernel: tpu_custom_call.1
= control target key start
LH: loop header
LB: loop body
LE: loop exit
PB: predicated region body
PF: predicated region fallthrough
CT: control target
= control target key end

     0   :  { %12 = vsyncpa [#allocation3], 0  ;;  %s546_s0 = inlined_call_operand.hbm [shape: bf16[16,16], index: 0, kind: input, shape index: {}]   ;;  %s547_s1 = inlined_call_operand.hbm [shape: bf16[16,128], index: 1, kind: input, shape index: {}]   ;;  %s548_s2 = inlined_call_operand.vmem [shape: f32[1,128], index: 2, kind: input, shape index: {}]   ;;  %s549_s3 = inlined_call_operand.vmem [shape: bf16[128,128], index: 3, kind: input, shape index: {}]   ;;  %s550_s4 = inlined_call_operand.vmem [shape: f32[1,128], index: 4, kind: input, shape index: {}]   ;;  %s551_s5 = inlined_call_operand.vmem [shape: bf16[128,8], index: 5, kind: input, shape index: {}]   ;;  %s552_s6 = inlined_call_operand.vmem [shape: f32[1,8], index: 6, kind: input, shape index: {}]   ;;  %s553_s7 = inlined_call_operand.vmem [shape: f32[16,8], index: 7, kind: output, shape index: {}]  }
   0x1   :  { %s18_s26 = sshll.u32 %s546_s0, 4  ;;  %s19_s26 = int_to_ptr.hbm [resolvable:$true] %s18_s26 }
   0x2   :  { %13 = vsyncpa [#allocation5], 0  ;;  %s433_s27 = smov [#allocation2]   ;;  %s31_s8 = sshll.u32 %s547_s1, 4  ;;  %s32_s8 = int_to_ptr.hbm [resolvable:$true] %s31_s8 }
   0x3   :  { %s20_s28 = sshll.u32 %s433_s27, 4  ;;  %s434_s9 = smov 64   ;;  %s21_s28 = int_to_ptr.vmem [resolvable:$true] %s20_s28 }
   0x4   :  { %s435_s10 = smov 4   ;;  %s436_s11 = smov [#allocation4]  }
   0x5   :  { %26 = dma.hbm_to_vmem [thread:$0]  %s19_s26, 128, %s21_s28, [#allocation3], %s434_s9, %s434_s9, %s435_s10  }
   0x6   :  { %s33_s12 = sshll.u32 %s436_s11, 4  ;;  %s34_s12 = int_to_ptr.vmem [resolvable:$true] %s33_s12 }
   0x7   :  { %39 = dma.hbm_to_vmem [thread:$0]  %s32_s8, 128, %s34_s12, [#allocation5], %s434_s9, %s434_s9, %s435_s10  }
   0x8   :  { %429 = dma.done.wait [#allocation3], 128  }
   0x9   :  { %430 = vsyncadd [#allocation3], 4294967168 }
   0xa   :  { %431 = dma.done.wait [#allocation5], 128  }
   0xb   :  { %432 = vsyncadd [#allocation5], 4294967168  ;;  %v349_v0 = vld [vmem:[#allocation4] sm:$0xff]  ;;  %v357_v1 = vld [vmem:[%s549_s3 + $0x38] sm:$0xff]  ;;  %vm78_vm0 = vcmask 130048   ;;  %vm266_vm1 = vcmask 64512  }
   0xc   :  { %v348_v2 = vld [vmem:[#allocation2] sm:$0xff]  ;;  %89 = vmatpush.bf16.msra.mxu0 %v349_v0  ;;  %167 = vmatpush.bf16.msra.mxu1 %v357_v1  ;;  %v356_v3 = vld [vmem:[%s549_s3 + $0x30] sm:$0xff]  ;;  %v355_v4 = vld [vmem:[%s549_s3 + $0x28] sm:$0xff] }
   0xd   :  { %v354_v5 = vld [vmem:[%s549_s3 + $0x20] sm:$0xff]  ;;  %v353_v6 = vld [vmem:[%s549_s3 + $0x18] sm:$0xff]  ;;  %v352_v7 = vld [vmem:[%s549_s3 + $0x10] sm:$0xff] }
   0xe   :  { %v351_v8 = vld [vmem:[%s549_s3 + $0x8] sm:$0xff]  ;;  %v350_v9 = vld [vmem:[%s549_s3] sm:$0xff]  ;;  %v365_v10 = vld [vmem:[%s551_s5 + $0x38] sm:$0xff] }
   0xf   :  { %283 = vmatmul.msk.bf16.vlgmr.msra.gmra.mxu0 %vm78_vm0, %v348_v2  ;;  %252 = vmatpush.bf16.msra.mxu2 %v365_v10  ;;  %v364_v11 = vld [vmem:[%s551_s5 + $0x30] sm:$0xff]  ;;  %v363_v12 = vld [vmem:[%s551_s5 + $0x28] sm:$0xff]  ;;  %v370_v14 = vld [vmem:[%s548_s2] ss:$0 sm:$0xff] }
  0x10   :  { %168 = vmatpush.bf16.msra.mxu1 %v356_v3  ;;  %v362_v21 = vld [vmem:[%s551_s5 + $0x20] sm:$0xff]  ;;  %v361_v22 = vld [vmem:[%s551_s5 + $0x18] sm:$0xff]  ;;  %v360_v23 = vld [vmem:[%s551_s5 + $0x10] sm:$0xff] }
  0x11   :  { %v359_v24 = vld [vmem:[%s551_s5 + $0x8] sm:$0xff]  ;;  %v358_v25 = vld [vmem:[%s551_s5] sm:$0xff] }
  0x12   :  { %v371_v27 = vld [vmem:[%s550_s4] ss:$0 sm:$0xff] }
  0x13   :  { %253 = vmatpush.bf16.msra.mxu2 %v364_v11  ;;  %v372_v34 = vld [vmem:[%s552_s6] ss:$0 sm:$0xff] }
  0x14   :  { %169 = vmatpush.bf16.msra.mxu1 %v355_v4 }
  0x17   :  { %254 = vmatpush.bf16.msra.mxu2 %v363_v12 }
  0x18   :  { %170 = vmatpush.bf16.msra.mxu1 %v354_v5 }
  0x1b   :  { %255 = vmatpush.bf16.msra.mxu2 %v362_v21 }
  0x1c   :  { %171 = vmatpush.bf16.msra.mxu1 %v353_v6 }
  0x1f   :  { %256 = vmatpush.bf16.msra.mxu2 %v361_v22 }
  0x20   :  { %172 = vmatpush.bf16.msra.mxu1 %v352_v7 }
  0x23   :  { %257 = vmatpush.bf16.msra.mxu2 %v360_v23 }
  0x24   :  { %173 = vmatpush.bf16.msra.mxu1 %v351_v8 }
  0x27   :  { %258 = vmatpush.bf16.msra.mxu2 %v359_v24 }
  0x28   :  { %174 = vmatpush.bf16.msra.mxu1 %v350_v9 }
  0x2b   :  { %259 = vmatpush.bf16.msra.mxu2 %v358_v25 }
  0x8c   :  { %v91_v13 = vpop.f32.mrf.mxu0 }
  0x8d   :  { %v92_v15 = vadd.f32 %v370_v14, %v91_v13 }
  0x8f   :  { %373 = vtanh.f32 %v92_v15 }
  0x94   :  { %v93_v16 = vpop.f32.mrf.mxu0 }
  0x95   :  { %v94_v17 = vadd.f32 %v370_v14, %v93_v16  ;;  %v374_v18 = vpop.eup %373 }
  0x97   :  { %375 = vtanh.f32 %v94_v17 }
  0x9d   :  { %v376_v19 = vpop.eup %375 }
  0x9e   :  { %v98_v20 = vpack.c.bf16 %v376_v19, %v374_v18 }
  0xa0   :  { %175 = vmatmul.bf16.vlgmr.msra.gmra.mxu1 %v98_v20 }
 0x11d   :  { %v176_v26 = vpop.f32.mrf.mxu1 }
 0x11e   :  { %v177_v28 = vadd.f32 %v371_v27, %v176_v26 }
 0x120   :  { %377 = vtanh.f32 %v177_v28 }
 0x125   :  { %v178_v29 = vpop.f32.mrf.mxu1 }
 0x126   :  { %v179_v30 = vadd.f32 %v371_v27, %v178_v29  ;;  %v378_v31 = vpop.eup %377 }
 0x128   :  { %379 = vtanh.f32 %v179_v30 }
 0x12e   :  { %v380_v32 = vpop.eup %379 }
 0x12f   :  { %v183_v33 = vpack.c.bf16 %v380_v32, %v378_v31 }
 0x131   :  { %260 = vmatmul.bf16.vlgmr.msra.gmra.mxu2 %v183_v33 }
 0x1b4   :  { %v261_v35 = vpop.f32.mrf.mxu2 }
 0x1b5   :  { %v262_v36 = vadd.f32 %v372_v34, %v261_v35 }
 0x1b7   :  { %267 = vst.msk [vmem:[%s553_s7] sm:$0xff] %vm266_vm1, %v262_v36 }
 0x1bc   :  { %v263_v37 = vpop.f32.mrf.mxu2 }
 0x1bd   :  { %v264_v38 = vadd.f32 %v372_v34, %v263_v37 }
 0x1bf   :  { %268 = vst.msk [vmem:[%s553_s7 + $0x8] sm:$0xff] %vm266_vm1, %v264_v38 }
 0x1c0   :  { %273 = vsyncpa [#allocation3], 1 }
 0x1c1   :  { %274 = vsyncpa [#allocation5], 1 }

// kernel: tpu_custom_call.1
= control target key start
LH: loop header
LB: loop body
LE: loop exit
PB: predicated region body
PF: predicated region fallthrough
CT: control target
= control target key end

     0   :  { %12 = vsyncpa [#allocation3], 0  ;;  %s546_s0 = inlined_call_operand.hbm [shape: bf16[16,16], index: 0, kind: input, shape index: {}]   ;;  %s547_s1 = inlined_call_operand.hbm [shape: bf16[16,128], index: 1, kind: input, shape index: {}]   ;;  %s548_s2 = inlined_call_operand.vmem [shape: f32[1,128], index: 2, kind: input, shape index: {}]   ;;  %s549_s3 = inlined_call_operand.vmem [shape: bf16[128,128], index: 3, kind: input, shape index: {}]   ;;  %s550_s4 = inlined_call_operand.vmem [shape: f32[1,128], index: 4, kind: input, shape index: {}]   ;;  %s551_s5 = inlined_call_operand.vmem [shape: bf16[128,8], index: 5, kind: input, shape index: {}]   ;;  %s552_s6 = inlined_call_operand.vmem [shape: f32[1,8], index: 6, kind: input, shape index: {}]   ;;  %s553_s7 = inlined_call_operand.vmem [shape: f32[16,8], index: 7, kind: output, shape index: {}]  }
   0x1   :  { %s18_s26 = sshll.u32 %s546_s0, 4  ;;  %s19_s26 = int_to_ptr.hbm [resolvable:$true] %s18_s26 }
   0x2   :  { %13 = vsyncpa [#allocation5], 0  ;;  %s433_s27 = smov [#allocation2]   ;;  %s31_s8 = sshll.u32 %s547_s1, 4  ;;  %s32_s8 = int_to_ptr.hbm [resolvable:$true] %s31_s8 }
   0x3   :  { %s20_s28 = sshll.u32 %s433_s27, 4  ;;  %s434_s9 = smov 64   ;;  %s21_s28 = int_to_ptr.vmem [resolvable:$true] %s20_s28 }
   0x4   :  { %s435_s10 = smov 4   ;;  %s436_s11 = smov [#allocation4]  }
   0x5   :  { %26 = dma.hbm_to_vmem [thread:$0]  %s19_s26, 128, %s21_s28, [#allocation3], %s434_s9, %s434_s9, %s435_s10  }
   0x6   :  { %s33_s12 = sshll.u32 %s436_s11, 4  ;;  %s34_s12 = int_to_ptr.vmem [resolvable:$true] %s33_s12 }
   0x7   :  { %39 = dma.hbm_to_vmem [thread:$0]  %s32_s8, 128, %s34_s12, [#allocation5], %s434_s9, %s434_s9, %s435_s10  }
   0x8   :  { %429 = dma.done.wait [#allocation3], 128  }
   0x9   :  { %430 = vsyncadd [#allocation3], 4294967168 }
   0xa   :  { %431 = dma.done.wait [#allocation5], 128  }
   0xb   :  { %432 = vsyncadd [#allocation5], 4294967168  ;;  %v349_v0 = vld [vmem:[#allocation4] sm:$0xff]  ;;  %v357_v1 = vld [vmem:[%s549_s3 + $0x38] sm:$0xff]  ;;  %vm78_vm0 = vcmask 130048   ;;  %vm266_vm1 = vcmask 64512  }
   0xc   :  { %v348_v2 = vld [vmem:[#allocation2] sm:$0xff]  ;;  %89 = vmatpush.bf16.msra.mxu0 %v349_v0  ;;  %167 = vmatpush.bf16.msra.mxu1 %v357_v1  ;;  %v356_v3 = vld [vmem:[%s549_s3 + $0x30] sm:$0xff]  ;;  %v355_v4 = vld [vmem:[%s549_s3 + $0x28] sm:$0xff] }
   0xd   :  { %v354_v5 = vld [vmem:[%s549_s3 + $0x20] sm:$0xff]  ;;  %v353_v6 = vld [vmem:[%s549_s3 + $0x18] sm:$0xff]  ;;  %v352_v7 = vld [vmem:[%s549_s3 + $0x10] sm:$0xff] }
   0xe   :  { %v351_v8 = vld [vmem:[%s549_s3 + $0x8] sm:$0xff]  ;;  %v350_v9 = vld [vmem:[%s549_s3] sm:$0xff]  ;;  %v365_v10 = vld [vmem:[%s551_s5 + $0x38] sm:$0xff] }
   0xf   :  { %283 = vmatmul.msk.bf16.vlgmr.msra.gmra.mxu0 %vm78_vm0, %v348_v2  ;;  %252 = vmatpush.bf16.msra.mxu2 %v365_v10  ;;  %v364_v11 = vld [vmem:[%s551_s5 + $0x30] sm:$0xff]  ;;  %v363_v12 = vld [vmem:[%s551_s5 + $0x28] sm:$0xff]  ;;  %v370_v14 = vld [vmem:[%s548_s2] ss:$0 sm:$0xff] }
  0x10   :  { %168 = vmatpush.bf16.msra.mxu1 %v356_v3  ;;  %v362_v21 = vld [vmem:[%s551_s5 + $0x20] sm:$0xff]  ;;  %v361_v22 = vld [vmem:[%s551_s5 + $0x18] sm:$0xff]  ;;  %v360_v23 = vld [vmem:[%s551_s5 + $0x10] sm:$0xff] }
  0x11   :  { %v359_v24 = vld [vmem:[%s551_s5 + $0x8] sm:$0xff]  ;;  %v358_v25 = vld [vmem:[%s551_s5] sm:$0xff] }
  0x12   :  { %v371_v27 = vld [vmem:[%s550_s4] ss:$0 sm:$0xff] }
  0x13   :  { %253 = vmatpush.bf16.msra.mxu2 %v364_v11  ;;  %v372_v34 = vld [vmem:[%s552_s6] ss:$0 sm:$0xff] }
  0x14   :  { %169 = vmatpush.bf16.msra.mxu1 %v355_v4 }
  0x17   :  { %254 = vmatpush.bf16.msra.mxu2 %v363_v12 }
  0x18   :  { %170 = vmatpush.bf16.msra.mxu1 %v354_v5 }
  0x1b   :  { %255 = vmatpush.bf16.msra.mxu2 %v362_v21 }
  0x1c   :  { %171 = vmatpush.bf16.msra.mxu1 %v353_v6 }
  0x1f   :  { %256 = vmatpush.bf16.msra.mxu2 %v361_v22 }
  0x20   :  { %172 = vmatpush.bf16.msra.mxu1 %v352_v7 }
  0x23   :  { %257 = vmatpush.bf16.msra.mxu2 %v360_v23 }
  0x24   :  { %173 = vmatpush.bf16.msra.mxu1 %v351_v8 }
  0x27   :  { %258 = vmatpush.bf16.msra.mxu2 %v359_v24 }
  0x28   :  { %174 = vmatpush.bf16.msra.mxu1 %v350_v9 }
  0x2b   :  { %259 = vmatpush.bf16.msra.mxu2 %v358_v25 }
  0x8c   :  { %v91_v13 = vpop.f32.mrf.mxu0 }
  0x8d   :  { %v92_v15 = vadd.f32 %v370_v14, %v91_v13 }
  0x8f   :  { %373 = vtanh.f32 %v92_v15 }
  0x94   :  { %v93_v16 = vpop.f32.mrf.mxu0 }
  0x95   :  { %v94_v17 = vadd.f32 %v370_v14, %v93_v16  ;;  %v374_v18 = vpop.eup %373 }
  0x97   :  { %375 = vtanh.f32 %v94_v17 }
  0x9d   :  { %v376_v19 = vpop.eup %375 }
  0x9e   :  { %v98_v20 = vpack.c.bf16 %v376_v19, %v374_v18 }
  0xa0   :  { %175 = vmatmul.bf16.vlgmr.msra.gmra.mxu1 %v98_v20 }
 0x11d   :  { %v176_v26 = vpop.f32.mrf.mxu1 }
 0x11e   :  { %v177_v28 = vadd.f32 %v371_v27, %v176_v26 }
 0x120   :  { %377 = vtanh.f32 %v177_v28 }
 0x125   :  { %v178_v29 = vpop.f32.mrf.mxu1 }
 0x126   :  { %v179_v30 = vadd.f32 %v371_v27, %v178_v29  ;;  %v378_v31 = vpop.eup %377 }
 0x128   :  { %379 = vtanh.f32 %v179_v30 }
 0x12e   :  { %v380_v32 = vpop.eup %379 }
 0x12f   :  { %v183_v33 = vpack.c.bf16 %v380_v32, %v378_v31 }
 0x131   :  { %260 = vmatmul.bf16.vlgmr.msra.gmra.mxu2 %v183_v33 }
 0x1b4   :  { %v261_v35 = vpop.f32.mrf.mxu2 }
 0x1b5   :  { %v262_v36 = vadd.f32 %v372_v34, %v261_v35 }
 0x1b7   :  { %267 = vst.msk [vmem:[%s553_s7] sm:$0xff] %vm266_vm1, %v262_v36 }
 0x1bc   :  { %v263_v37 = vpop.f32.mrf.mxu2 }
 0x1bd   :  { %v264_v38 = vadd.f32 %v372_v34, %v263_v37 }
 0x1bf   :  { %268 = vst.msk [vmem:[%s553_s7 + $0x8] sm:$0xff] %vm266_vm1, %v264_v38 }
 0x1c0   :  { %273 = vsyncpa [#allocation3], 1 }
 0x1c1   :  { %274 = vsyncpa [#allocation5], 1 }

</bundles_post_ra>
